<compile_context>
chip_gen: v7x
topology: tpu7x:2x2x1
jax: 0.10.0
libtpu: 0.0.40
codegen_flags: <defaults>
</compile_context>

<pallas_src>
import functools

import jax
import jax.numpy as jnp
from jax.experimental import pallas as pl
from jax.experimental.pallas import tpu as pltpu

IN_DIM = 2
HID_DIM = 50
OUT_DIM = 2

GROUPS = 4              # batch sub-groups packed on sublanes (GROUPS * IN_DIM = 8 sublanes)
LANE = 128              # TPU lane width
CHUNK_MAX = 512         # inner chunk lane width: h = (50, 512) f32 ~ 28 vregs
BLOCK_CHUNKS_MAX = 4    # lane block = up to 4 chunks (2048 lanes = 8192 batch rows / grid step)


def neural_ode_kernel(u_ref, w1t_ref, b1_ref, w2t_ref, b2_ref, o_ref, *, chunk, n_chunks):
    # u_ref / o_ref: (8, TB) -- 4 batch groups x 2 features (outputs) on sublanes,
    #                            batch on lanes.
    # Hoist weight/bias loads + slices once, outside the chunk loop.
    w1t = w1t_ref[...]              # (HID_DIM, IN_DIM)
    w10 = w1t[:, 0:1]               # (HID_DIM, 1)
    w11 = w1t[:, 1:2]               # (HID_DIM, 1)
    b1 = b1_ref[...]                # (HID_DIM, 1)
    w2t = w2t_ref[...]              # (OUT_DIM, HID_DIM)
    b2 = b2_ref[...]                # (OUT_DIM, 1)

    @pl.loop(0, n_chunks)
    def _(c):
        off = pl.multiple_of(c * chunk, chunk)
        uc = u_ref[:, pl.ds(off, chunk)]         # (8, chunk): all 4 groups
        xc = uc * uc * uc                        # u**3, all groups at once (2 VPU muls)

        outs = []
        for g in range(GROUPS):                  # static: 4 groups on sublanes
            x0 = xc[2 * g:2 * g + 1, :]          # (1, chunk)
            x1 = xc[2 * g + 1:2 * g + 2, :]      # (1, chunk)
            # Linear(2, 50) as broadcast-FMA over batch lanes, then tanh (EUP).
            # (Optional: cast h to bf16 before tanh on v6e/v7x for ~2x EUP throughput.)
            h = jnp.tanh(w10 * x0 + w11 * x1 + b1)          # (HID_DIM, chunk)
            # Linear(50, 2): small MXU matmul, f32 accumulation.
            # (Optional on v5e: feed w2t/h as bf16 to cut the f32 multi-pass decomposition.)
            og = jnp.dot(w2t, h, preferred_element_type=jnp.float32) + b2   # (OUT_DIM, chunk)
            outs.append(og)

        # Re-pack the 4 groups into a dense 8-sublane slab: unmasked, lane-aligned store.
        o_ref[:, pl.ds(off, chunk)] = jnp.concatenate(outs, axis=0).astype(o_ref.dtype)


def _tile_sizes(batch):
    """Pick (chunk, chunks_per_block, block_lanes, per_group_lanes) for a batch size."""
    per_group = pl.cdiv(batch, GROUPS)
    lanes = pl.cdiv(per_group, LANE) * LANE          # per-group lanes, 128-aligned
    chunk = min(CHUNK_MAX, lanes)                    # vreg-pressure-bound inner chunk
    n_chunks = pl.cdiv(lanes, chunk)
    cpb = min(BLOCK_CHUNKS_MAX, n_chunks)            # chunks per grid block
    if n_chunks < 2 * cpb and n_chunks >= 2:
        cpb = pl.cdiv(n_chunks, 2)                   # keep >=2 grid tiles for v7x megacore
    tb = cpb * chunk                                 # lane-block width per grid step
    lanes = pl.cdiv(lanes, tb) * tb                  # pad per-group lanes to a block multiple
    return chunk, cpb, tb, lanes


def neural_ode_forward(t, u, w1, b1, w2, b2):
    """t: unused (API parity with the PyTorch module).
    u: [B, 2] float32.  w1: (2,50), b1: (50,), w2: (50,2), b2: (2,).
    Returns [B, 2] float32."""
    del t  # module ignores t
    B = u.shape[0]
    chunk, cpb, tb, L = _tile_sizes(B)
    Bp = GROUPS * L
    n_tiles = L // tb

    # ---- wrapper-side layout plumbing (outside the kernel) -------------------
    # Batch on lanes, 4 contiguous batch groups packed on sublanes -> dense (8, L) slab.
    u_t = jnp.pad(u.T.astype(jnp.float32), ((0, 0), (0, Bp - B)))          # (2, Bp)
    u_packed = (u_t.reshape(IN_DIM, GROUPS, L)
                   .transpose(1, 0, 2)
                   .reshape(GROUPS * IN_DIM, L))                           # (8, L)

    w1_t = w1.T.astype(jnp.float32)                    # (HID_DIM, IN_DIM)
    b1_c = b1.reshape(HID_DIM, 1).astype(jnp.float32)  # (HID_DIM, 1)
    w2_t = w2.T.astype(jnp.float32)                    # (OUT_DIM, HID_DIM)
    b2_c = b2.reshape(OUT_DIM, 1).astype(jnp.float32)  # (OUT_DIM, 1)

    cost = pl.CostEstimate(
        flops=Bp * (2 * IN_DIM + 2 * IN_DIM * HID_DIM + 2 * HID_DIM * OUT_DIM),
        transcendentals=Bp * HID_DIM,
        bytes_accessed=4 * (2 * GROUPS * IN_DIM * L            # dense packed in + out slabs
                            + IN_DIM * HID_DIM + HID_DIM
                            + HID_DIM * OUT_DIM + OUT_DIM),
    )

    kernel = functools.partial(neural_ode_kernel, chunk=chunk, n_chunks=cpb)

    o_packed = pl.pallas_call(
        kernel,
        out_shape=jax.ShapeDtypeStruct((GROUPS * OUT_DIM, L), jnp.float32),
        grid=(n_tiles,),
        in_specs=[
            pl.BlockSpec((GROUPS * IN_DIM, tb), lambda i: (0, i)),   # packed batch slab, tiled over lanes
            pl.BlockSpec((HID_DIM, IN_DIM), lambda i: (0, 0)),       # W1^T: VMEM-resident
            pl.BlockSpec((HID_DIM, 1), lambda i: (0, 0)),            # b1:   VMEM-resident
            pl.BlockSpec((OUT_DIM, HID_DIM), lambda i: (0, 0)),      # W2^T: VMEM-resident
            pl.BlockSpec((OUT_DIM, 1), lambda i: (0, 0)),            # b2:   VMEM-resident
        ],
        out_specs=pl.BlockSpec((GROUPS * OUT_DIM, tb), lambda i: (0, i)),
        compiler_params=pltpu.CompilerParams(
            dimension_semantics=("parallel",),
        ),
        cost_estimate=cost,
    )(u_packed, w1_t, b1_c, w2_t, b2_c)

    # Unpack: (8, L) -> (2, Bp) -> drop padding -> [B, 2]
    o_t = (o_packed.reshape(GROUPS, OUT_DIM, L)
                   .transpose(1, 0, 2)
                   .reshape(OUT_DIM, Bp))
    return o_t[:, :B].T

    # TODO(synk): if this forward is driven by an ODE solver loop, fuse the stepping
    # loop into the kernel (weights are ~1 KB and stay VMEM-resident) and keep the
    # packed (feature, batch) layout across steps so the pad/transpose wrapper ops
    # and per-call launch overhead are paid once, not per RK step.


def init_params(key):
    """Deterministic init matching nn.Linear shapes, stored (in, out):
    W1: (2, 50), b1: (50,), W2: (50, 2), b2: (2,)."""
    k1, k2, k3, k4 = jax.random.split(key, 4)
    bound1 = 1.0 / jnp.sqrt(IN_DIM)
    bound2 = 1.0 / jnp.sqrt(HID_DIM)
    w1 = jax.random.uniform(k1, (IN_DIM, HID_DIM), jnp.float32, -bound1, bound1)
    b1 = jax.random.uniform(k2, (HID_DIM,), jnp.float32, -bound1, bound1)
    w2 = jax.random.uniform(k3, (HID_DIM, OUT_DIM), jnp.float32, -bound2, bound2)
    b2 = jax.random.uniform(k4, (OUT_DIM,), jnp.float32, -bound2, bound2)
    return w1, b1, w2, b2


def reference_forward(t, u, w1, b1, w2, b2):
    del t
    x = u ** 3
    h = jnp.tanh(x @ w1 + b1)
    return h @ w2 + b2


if __name__ == "__main__":
    key = jax.random.PRNGKey(0)
    k_u, k_u2, k_p = jax.random.split(key, 3)

    w1, b1, w2, b2 = init_params(k_p)
    t = jnp.float32(0.0)  # unused, mirrors the torch signature

    # Small batch of ODE states (single tile, single chunk).
    B = 8
    u = jax.random.normal(k_u, (B, IN_DIM), jnp.float32)
    out = jax.block_until_ready(neural_ode_forward(t, u, w1, b1, w2, b2))
    ref = reference_forward(t, u, w1, b1, w2, b2)
    assert out.shape == (B, OUT_DIM), out.shape
    assert jnp.allclose(out, ref, atol=1e-5, rtol=1e-5), (
        f"max abs err {jnp.max(jnp.abs(out - ref))}"
    )

    # Larger batch exercising multi-chunk / multi-tile (megacore) path + group padding.
    B2 = 5000
    u2 = jax.random.normal(k_u2, (B2, IN_DIM), jnp.float32)
    out2 = jax.block_until_ready(neural_ode_forward(t, u2, w1, b1, w2, b2))
    ref2 = reference_forward(t, u2, w1, b1, w2, b2)
    assert out2.shape == (B2, OUT_DIM), out2.shape
    assert jnp.allclose(out2, ref2, atol=1e-5, rtol=1e-5), (
        f"max abs err {jnp.max(jnp.abs(out2 - ref2))}"
    )

    print("KERNEL_OK")
</pallas_src>

<mosaic_0001>
module attributes {stable_mosaic.version = 11 : i64} {
  func.func @neural_ode_kernel(%arg0: i32, %arg1: memref<8x128xf32, #tpu.memory_space<vmem>>, %arg2: memref<50x2xf32, #tpu.memory_space<vmem>>, %arg3: memref<50x1xf32, #tpu.memory_space<vmem>>, %arg4: memref<2x50xf32, #tpu.memory_space<vmem>>, %arg5: memref<2x1xf32, #tpu.memory_space<vmem>>, %arg6: memref<8x128xf32, #tpu.memory_space<vmem>>) attributes {dimension_semantics = [#tpu.dimension_semantics<parallel>], iteration_bounds = array<i64: 1>, scalar_prefetch = 0 : i64, scratch_operands = 0 : i64, tpu.core_type = #tpu.core_type<tc>, window_params = [{transform_indices = @transform_0, window_bounds = array<i64: 8, 128>}, {pipeline_mode = #tpu.pipeline_mode<synchronous>, transform_indices = @transform_1, window_bounds = array<i64: 50, 2>}, {pipeline_mode = #tpu.pipeline_mode<synchronous>, transform_indices = @transform_2, window_bounds = array<i64: 50, 1>}, {pipeline_mode = #tpu.pipeline_mode<synchronous>, transform_indices = @transform_3, window_bounds = array<i64: 2, 50>}, {pipeline_mode = #tpu.pipeline_mode<synchronous>, transform_indices = @transform_4, window_bounds = array<i64: 2, 1>}, {transform_indices = @transform_5, window_bounds = array<i64: 8, 128>}]} {
    %c0 = arith.constant 0 : index
    %c0_0 = arith.constant 0 : index
    %0 = vector.load %arg2[%c0, %c0_0] : memref<50x2xf32, #tpu.memory_space<vmem>>, vector<50x2xf32>
    %1 = vector.extract_strided_slice %0 {offsets = [0, 0], sizes = [50, 1], strides = [1, 1]} : vector<50x2xf32> to vector<50x1xf32>
    %2 = vector.extract_strided_slice %0 {offsets = [0, 1], sizes = [50, 1], strides = [1, 1]} : vector<50x2xf32> to vector<50x1xf32>
    %c0_1 = arith.constant 0 : index
    %c0_2 = arith.constant 0 : index
    %3 = vector.load %arg3[%c0_1, %c0_2] : memref<50x1xf32, #tpu.memory_space<vmem>>, vector<50x1xf32>
    %c0_3 = arith.constant 0 : index
    %c0_4 = arith.constant 0 : index
    %4 = vector.load %arg4[%c0_3, %c0_4] : memref<2x50xf32, #tpu.memory_space<vmem>>, vector<2x50xf32>
    %c0_5 = arith.constant 0 : index
    %c0_6 = arith.constant 0 : index
    %5 = vector.load %arg5[%c0_5, %c0_6] : memref<2x1xf32, #tpu.memory_space<vmem>>, vector<2x1xf32>
    %c0_i32 = arith.constant 0 : i32
    %c1_i32 = arith.constant 1 : i32
    %6 = arith.muli %c0_i32, %c1_i32 : i32
    %c0_i32_7 = arith.constant 0 : i32
    %7 = arith.addi %c0_i32_7, %6 : i32
    %c128_i32 = arith.constant 128 : i32
    %8 = arith.muli %7, %c128_i32 : i32
    %9 = tpu.assume_multiple %8, 128 : i32
    %c0_8 = arith.constant 0 : index
    %10 = arith.index_cast %9 : i32 to index
    %11 = vector.load %arg1[%c0_8, %10] : memref<8x128xf32, #tpu.memory_space<vmem>>, vector<8x128xf32>
    %12 = arith.mulf %11, %11 : vector<8x128xf32>
    %13 = arith.mulf %12, %11 : vector<8x128xf32>
    %14 = vector.extract_strided_slice %13 {offsets = [0, 0], sizes = [1, 128], strides = [1, 1]} : vector<8x128xf32> to vector<1x128xf32>
    %15 = vector.extract_strided_slice %13 {offsets = [1, 0], sizes = [1, 128], strides = [1, 1]} : vector<8x128xf32> to vector<1x128xf32>
    %16 = vector.broadcast %1 : vector<50x1xf32> to vector<50x128xf32>
    %17 = vector.broadcast %14 : vector<1x128xf32> to vector<50x128xf32>
    %18 = arith.mulf %16, %17 : vector<50x128xf32>
    %19 = vector.broadcast %2 : vector<50x1xf32> to vector<50x128xf32>
    %20 = vector.broadcast %15 : vector<1x128xf32> to vector<50x128xf32>
    %21 = arith.mulf %19, %20 : vector<50x128xf32>
    %22 = arith.addf %18, %21 : vector<50x128xf32>
    %23 = vector.broadcast %3 : vector<50x1xf32> to vector<50x128xf32>
    %24 = arith.addf %22, %23 : vector<50x128xf32>
    %25 = math.tanh %24 : vector<50x128xf32>
    %cst = arith.constant dense<0.000000e+00> : vector<2x128xf32>
    %26 = tpu.matmul %4, %25, %cst {dimension_numbers = #tpu.dot_dimension_numbers<[1], [0], [0], [1], [0, 0, 1, 1], [], []>} : vector<2x50xf32>, vector<50x128xf32>, vector<2x128xf32> -> vector<2x128xf32>
    %27 = vector.broadcast %5 : vector<2x1xf32> to vector<2x128xf32>
    %28 = arith.addf %26, %27 : vector<2x128xf32>
    %29 = vector.extract_strided_slice %13 {offsets = [2, 0], sizes = [1, 128], strides = [1, 1]} : vector<8x128xf32> to vector<1x128xf32>
    %30 = vector.extract_strided_slice %13 {offsets = [3, 0], sizes = [1, 128], strides = [1, 1]} : vector<8x128xf32> to vector<1x128xf32>
    %31 = vector.broadcast %1 : vector<50x1xf32> to vector<50x128xf32>
    %32 = vector.broadcast %29 : vector<1x128xf32> to vector<50x128xf32>
    %33 = arith.mulf %31, %32 : vector<50x128xf32>
    %34 = vector.broadcast %2 : vector<50x1xf32> to vector<50x128xf32>
    %35 = vector.broadcast %30 : vector<1x128xf32> to vector<50x128xf32>
    %36 = arith.mulf %34, %35 : vector<50x128xf32>
    %37 = arith.addf %33, %36 : vector<50x128xf32>
    %38 = vector.broadcast %3 : vector<50x1xf32> to vector<50x128xf32>
    %39 = arith.addf %37, %38 : vector<50x128xf32>
    %40 = math.tanh %39 : vector<50x128xf32>
    %cst_9 = arith.constant dense<0.000000e+00> : vector<2x128xf32>
    %41 = tpu.matmul %4, %40, %cst_9 {dimension_numbers = #tpu.dot_dimension_numbers<[1], [0], [0], [1], [0, 0, 1, 1], [], []>} : vector<2x50xf32>, vector<50x128xf32>, vector<2x128xf32> -> vector<2x128xf32>
    %42 = vector.broadcast %5 : vector<2x1xf32> to vector<2x128xf32>
    %43 = arith.addf %41, %42 : vector<2x128xf32>
    %44 = vector.extract_strided_slice %13 {offsets = [4, 0], sizes = [1, 128], strides = [1, 1]} : vector<8x128xf32> to vector<1x128xf32>
    %45 = vector.extract_strided_slice %13 {offsets = [5, 0], sizes = [1, 128], strides = [1, 1]} : vector<8x128xf32> to vector<1x128xf32>
    %46 = vector.broadcast %1 : vector<50x1xf32> to vector<50x128xf32>
    %47 = vector.broadcast %44 : vector<1x128xf32> to vector<50x128xf32>
    %48 = arith.mulf %46, %47 : vector<50x128xf32>
    %49 = vector.broadcast %2 : vector<50x1xf32> to vector<50x128xf32>
    %50 = vector.broadcast %45 : vector<1x128xf32> to vector<50x128xf32>
    %51 = arith.mulf %49, %50 : vector<50x128xf32>
    %52 = arith.addf %48, %51 : vector<50x128xf32>
    %53 = vector.broadcast %3 : vector<50x1xf32> to vector<50x128xf32>
    %54 = arith.addf %52, %53 : vector<50x128xf32>
    %55 = math.tanh %54 : vector<50x128xf32>
    %cst_10 = arith.constant dense<0.000000e+00> : vector<2x128xf32>
    %56 = tpu.matmul %4, %55, %cst_10 {dimension_numbers = #tpu.dot_dimension_numbers<[1], [0], [0], [1], [0, 0, 1, 1], [], []>} : vector<2x50xf32>, vector<50x128xf32>, vector<2x128xf32> -> vector<2x128xf32>
    %57 = vector.broadcast %5 : vector<2x1xf32> to vector<2x128xf32>
    %58 = arith.addf %56, %57 : vector<2x128xf32>
    %59 = vector.extract_strided_slice %13 {offsets = [6, 0], sizes = [1, 128], strides = [1, 1]} : vector<8x128xf32> to vector<1x128xf32>
    %60 = vector.extract_strided_slice %13 {offsets = [7, 0], sizes = [1, 128], strides = [1, 1]} : vector<8x128xf32> to vector<1x128xf32>
    %61 = vector.broadcast %1 : vector<50x1xf32> to vector<50x128xf32>
    %62 = vector.broadcast %59 : vector<1x128xf32> to vector<50x128xf32>
    %63 = arith.mulf %61, %62 : vector<50x128xf32>
    %64 = vector.broadcast %2 : vector<50x1xf32> to vector<50x128xf32>
    %65 = vector.broadcast %60 : vector<1x128xf32> to vector<50x128xf32>
    %66 = arith.mulf %64, %65 : vector<50x128xf32>
    %67 = arith.addf %63, %66 : vector<50x128xf32>
    %68 = vector.broadcast %3 : vector<50x1xf32> to vector<50x128xf32>
    %69 = arith.addf %67, %68 : vector<50x128xf32>
    %70 = math.tanh %69 : vector<50x128xf32>
    %cst_11 = arith.constant dense<0.000000e+00> : vector<2x128xf32>
    %71 = tpu.matmul %4, %70, %cst_11 {dimension_numbers = #tpu.dot_dimension_numbers<[1], [0], [0], [1], [0, 0, 1, 1], [], []>} : vector<2x50xf32>, vector<50x128xf32>, vector<2x128xf32> -> vector<2x128xf32>
    %72 = vector.broadcast %5 : vector<2x1xf32> to vector<2x128xf32>
    %73 = arith.addf %71, %72 : vector<2x128xf32>
    %74 = tpu.concatenate %28, %43, %58, %73 in 0 : vector<2x128xf32>, vector<2x128xf32>, vector<2x128xf32>, vector<2x128xf32> -> vector<8x128xf32>
    %c0_12 = arith.constant 0 : index
    %75 = arith.index_cast %9 : i32 to index
    %76 = vector.load %arg6[%c0_12, %75] : memref<8x128xf32, #tpu.memory_space<vmem>>, vector<8x128xf32>
    tpu.vector_store %arg6[%c0_12, %75], %74 {strides = array<i32>} : memref<8x128xf32, #tpu.memory_space<vmem>>, vector<8x128xf32>,
    %c1_i32_13 = arith.constant 1 : i32
    return
  }
  func.func @transform_0(%arg0: i32) -> (i32, i32) {
    %c0_i32 = arith.constant 0 : i32
    %c0_i32_0 = arith.constant 0 : i32
    return %c0_i32, %arg0 : i32, i32
  }
  func.func @transform_1(%arg0: i32) -> (i32, i32) {
    %c0_i32 = arith.constant 0 : i32
    %c0_i32_0 = arith.constant 0 : i32
    %c0_i32_1 = arith.constant 0 : i32
    return %c0_i32, %c0_i32_0 : i32, i32
  }
  func.func @transform_2(%arg0: i32) -> (i32, i32) {
    %c0_i32 = arith.constant 0 : i32
    %c0_i32_0 = arith.constant 0 : i32
    %c0_i32_1 = arith.constant 0 : i32
    return %c0_i32, %c0_i32_0 : i32, i32
  }
  func.func @transform_3(%arg0: i32) -> (i32, i32) {
    %c0_i32 = arith.constant 0 : i32
    %c0_i32_0 = arith.constant 0 : i32
    %c0_i32_1 = arith.constant 0 : i32
    return %c0_i32, %c0_i32_0 : i32, i32
  }
  func.func @transform_4(%arg0: i32) -> (i32, i32) {
    %c0_i32 = arith.constant 0 : i32
    %c0_i32_0 = arith.constant 0 : i32
    %c0_i32_1 = arith.constant 0 : i32
    return %c0_i32, %c0_i32_0 : i32, i32
  }
  func.func @transform_5(%arg0: i32) -> (i32, i32) {
    %c0_i32 = arith.constant 0 : i32
    %c0_i32_0 = arith.constant 0 : i32
    return %c0_i32, %arg0 : i32, i32
  }
}

</mosaic_0001>

<bundles_post_ra>
// kernel: tpu_custom_call.1
= control target key start
LH: loop header
LB: loop body
LE: loop exit
PB: predicated region body
PF: predicated region fallthrough
CT: control target
= control target key end

     0   :  { %v881_v2 = vmov 1   ;;  %s1228_s0 = inlined_call_operand.vmem [shape: f32[8,128], index: 0, kind: input, shape index: {}]   ;;  %s1229_s1 = inlined_call_operand.vmem [shape: f32[50,2], index: 1, kind: input, shape index: {}]   ;;  %s1230_s2 = inlined_call_operand.vmem [shape: f32[50,1], index: 2, kind: input, shape index: {}]   ;;  %s1231_s3 = inlined_call_operand.vmem [shape: f32[2,50], index: 3, kind: input, shape index: {}]   ;;  %s1232_s4 = inlined_call_operand.vmem [shape: f32[2,1], index: 4, kind: input, shape index: {}]   ;;  %s1233_s5 = inlined_call_operand.hbm [shape: f32[8,128], index: 5, kind: output, shape index: {}]  }
   0x1   :  { %v23_v0 = vld [vmem:[%s1229_s1 + $0x10] sm:$0xff]  ;;  %v21_v1 = vld [vmem:[%s1229_s1] sm:$0xff]  ;;  %793 = vset.pattern.permute.xlu0 %v881_v2  ;;  %791 = vset.pattern.permute.xlu1 %v881_v2  ;;  %v22_v4 = vld [vmem:[%s1229_s1 + $0x8] sm:$0xff] }
   0x2   :  { %95 = vperm.xlu0 %793, %v23_v0   ;;  %87 = vperm.xlu1 %791, %v21_v1   ;;  %v25_v3 = vld [vmem:[%s1229_s1 + $0x20] sm:$0xff] }
   0x3   :  { %10 = vsyncpa [#allocation3], 0  ;;  %v24_v5 = vld [vmem:[%s1229_s1 + $0x18] sm:$0xff]  ;;  %v882_v6 = vmov 0   ;;  %v28_v7 = vld [vmem:[%s1230_s2] sm:$0xff]  ;;  %v883_v14 = vmov 0.0|0.0   ;;  %v75_v19 = vlaneseq }
   0x4   :  { %v29_v8 = vld [vmem:[%s1230_s2 + $0x8] sm:$0xff]  ;;  %v31_v9 = vld [vmem:[%s1230_s2 + $0x18] sm:$0xff]  ;;  %v27_v11 = vld [vmem:[%s1229_s1 + $0x30] sm:$0x3]  ;;  %749 = vmatprep.subr.bf16.mxu0 %v883_v14  ;;  %758 = vmatprep.subr.bf16.mxu1 %v883_v14  ;;  %vm884_vm0 = vmmov 0   ;;  %v885_v17 = vmov 0.0  }
   0x5   :  { %v26_v10 = vld [vmem:[%s1229_s1 + $0x28] sm:$0xff]  ;;  %v34_v12 = vld [vmem:[%s1230_s2 + $0x30] sm:$0x3]  ;;  %v32_v15 = vld [vmem:[%s1230_s2 + $0x20] sm:$0xff]  ;;  %695 = vmatprep.mubr.msk.f32.mxu0 %vm884_vm0, %v885_v17  ;;  %712 = vmatprep.mubr.msk.f32.mxu1 %vm884_vm0, %v885_v17  ;;  %v975_v24 = vshrl.u32 %v75_v19, 7  ;;  %vm190_vm1 = vcmask 1041408  }
   0x6   :  { %103 = vperm.xlu0 %793, %v25_v3   ;;  %91 = vperm.xlu1 %791, %v22_v4   ;;  %v30_v13 = vld [vmem:[%s1230_s2 + $0x10] sm:$0xff]  ;;  %v33_v16 = vld [vmem:[%s1230_s2 + $0x28] sm:$0xff]  ;;  %v36_v18 = vld [vmem:[%s1232_s4] sm:$0x3]  ;;  %vm186_vm2 = vcmask 408576   ;;  %vm622_vm3 = vcmask 1043456  }
   0x7   :  { %v37_v22 = vld [vmem:[%s1228_s0] sm:$0xff]  ;;  %v77_v27 = vsub.s32 0, %v975_v24  ;;  %v266_v28 = vsub.s32 2, %v975_v24  ;;  %v116_v30 = vsub.s32 1, %v975_v24  ;;  %v277_v31 = vsub.s32 3, %v975_v24 }
   0x8   :  { %v38_v23 = vmul.f32 %v37_v22, %v37_v22  ;;  %vm624_vm4 = vcmask 1045504  }
   0xa   :  { %796 = vset.pattern.permute.xlu0 %v882_v6  ;;  %792 = vset.pattern.permute.xlu1 %v882_v6  ;;  %v983_v29 = vmul.f32 %v38_v23, %v37_v22 }
   0xb   :  { %42 = vperm.xlu0 %796, %v21_v1   ;;  %57 = vperm.xlu1 %792, %v24_v5  }
   0xc   :  { %v992_v34 = vrot.slane %v983_v29, %v77_v27  ;;  %v995_v35 = vrot.slane %v983_v29, %v266_v28  ;;  %v998_v36 = vrot.slane %v983_v29, %v116_v30  ;;  %v1001_v37 = vrot.slane %v983_v29, %v277_v31 }
   0xf   :  { %47 = vperm.xlu0 %796, %v22_v4   ;;  %794 = vset.pattern.permute.xlu1 %v881_v2 }
  0x10   :  { %99 = vperm.xlu1 %794, %v24_v5  }
  0x13   :  { %52 = vperm.xlu0 %796, %v23_v0   ;;  %v393_v0 = vsub.s32 5, %v975_v24 }
  0x14   :  { %795 = vset.pattern.permute.xlu1 %v882_v6 }
  0x15   :  { %134 = vperm.xlu1 %795, %v28_v7   ;;  %v1064_v22 = vrot.slane %v983_v29, %v393_v0 }
  0x17   :  { %139 = vperm.xlu0 %796, %v29_v8  }
  0x19   :  { %62 = vperm.xlu1 %795, %v25_v3  }
  0x1b   :  { %149 = vperm.xlu0 %796, %v31_v9   ;;  %v509_v9 = vsub.s32 7, %v975_v24 }
  0x1d   :  { %67 = vperm.xlu1 %795, %v26_v10   ;;  %v1069_v31 = vrot.slane %v983_v29, %v509_v9 }
  0x1f   :  { %72 = vperm.xlu0 %796, %v27_v11  }
  0x21   :  { %797 = vset.pattern.permute.xlu1 %v881_v2 }
  0x22   :  { %107 = vperm.xlu1 %797, %v26_v10  }
  0x23   :  { %164 = vperm.xlu0 %796, %v34_v12  }
  0x26   :  { %798 = vset.pattern.permute.xlu1 %v882_v6 }
  0x27   :  { %144 = vperm.xlu1 %798, %v30_v13  }
  0x2b   :  { %154 = vperm.xlu1 %798, %v32_v15   ;;  %v382_v15 = vsub.s32 4, %v975_v24 }
  0x2f   :  { %159 = vperm.xlu1 %798, %v33_v16   ;;  %v498_v16 = vsub.s32 6, %v975_v24 }
  0x33   :  { %799 = vset.pattern.permute.xlu1 %v881_v2 }
  0x34   :  { %111 = vperm.xlu1 %799, %v27_v11  }
  0x38   :  { %800 = vset.pattern.permute.xlu1 %v882_v6 }
  0x39   :  { %183 = vperm.xlu1 %800, %v36_v18  }
  0x81   :  { %v968_v20 = vpop.permute.xlu1 %87  ;;  %v970_v21 = vpop.permute.xlu0 %95 }
  0x82   :  { %v118_v42 = vmul.f32 %v998_v36, %v968_v20  ;;  %v279_v44 = vmul.f32 %v1001_v37, %v968_v20  ;;  %v120_v1 = vmul.f32 %v998_v36, %v970_v21  ;;  %v281_v4 = vmul.f32 %v1001_v37, %v970_v21 }
  0x85   :  { %v977_v25 = vpop.permute.xlu1 %91  ;;  %v979_v26 = vpop.permute.xlu0 %103 }
  0x86   :  { %v119_v47 = vmul.f32 %v998_v36, %v977_v25  ;;  %v280_v49 = vmul.f32 %v1001_v37, %v977_v25  ;;  %v512_v9 = vmul.f32 %v1069_v31, %v977_v25 }
  0x8a   :  { %v987_v32 = vpop.permute.xlu0 %42  ;;  %v989_v33 = vpop.permute.xlu1 %57 }
  0x8b   :  { %v79_v39 = vmul.f32 %v992_v34, %v987_v32  ;;  %v268_v41 = vmul.f32 %v995_v35, %v987_v32  ;;  %v82_v63 = vmul.f32 %v992_v34, %v989_v33  ;;  %v271_v2 = vmul.f32 %v995_v35, %v989_v33 }
  0x8d   :  { %v125_v48 = vadd.f32 %v118_v42, %v79_v39  ;;  %v286_v50 = vadd.f32 %v279_v44, %v268_v41  ;;  %v122_v39 = vmul.f32 %v998_v36, %v979_v26 }
  0x8e   :  { %v1003_v38 = vpop.permute.xlu0 %47 }
  0x8f   :  { %v1007_v40 = vpop.permute.xlu1 %99  ;;  %v80_v43 = vmul.f32 %v992_v34, %v1003_v38  ;;  %v269_v45 = vmul.f32 %v995_v35, %v1003_v38 }
  0x90   :  { %v121_v61 = vmul.f32 %v998_v36, %v1007_v40  ;;  %v282_v62 = vmul.f32 %v1001_v37, %v1007_v40 }
  0x91   :  { %v126_v53 = vadd.f32 %v119_v47, %v80_v43  ;;  %v287_v56 = vadd.f32 %v280_v49, %v269_v45  ;;  %v283_v47 = vmul.f32 %v1001_v37, %v979_v26  ;;  %v1085_v49 = vrot.slane %v983_v29, %v498_v16 }
  0x92   :  { %v1019_v46 = vpop.permute.xlu0 %52  ;;  %v128_v7 = vadd.f32 %v121_v61, %v82_v63  ;;  %v289_v10 = vadd.f32 %v282_v62, %v271_v2  ;;  %v511_v62 = vmul.f32 %v1069_v31, %v968_v20  ;;  %v397_v63 = vmul.f32 %v1064_v22, %v970_v21 }
  0x93   :  { %v81_v5 = vmul.f32 %v992_v34, %v1019_v46  ;;  %v270_v6 = vmul.f32 %v995_v35, %v1019_v46  ;;  %v500_v2 = vmul.f32 %v1085_v49, %v987_v32 }
  0x94   :  { %v1025_v51 = vpop.permute.xlu1 %134 }
  0x95   :  { %v167_v52 = vadd.f32 %v1025_v51, %v125_v48  ;;  %v293_v54 = vadd.f32 %v286_v50, %v1025_v51  ;;  %v127_v27 = vadd.f32 %v120_v1, %v81_v5  ;;  %v288_v28 = vadd.f32 %v281_v4, %v270_v6 }
  0x96   :  { %v1029_v55 = vpop.permute.xlu0 %139  ;;  %v1082_v48 = vrot.slane %v983_v29, %v382_v15  ;;  %v395_v29 = vmul.f32 %v1064_v22, %v968_v20  ;;  %v396_v20 = vmul.f32 %v1064_v22, %v977_v25  ;;  %v503_v25 = vmul.f32 %v1085_v49, %v989_v33 }
  0x97   :  { %v168_v57 = vadd.f32 %v1029_v55, %v126_v53  ;;  %v294_v58 = vadd.f32 %v287_v56, %v1029_v55  ;;  %801 = vtanh.f32 %v167_v52 }
  0x98   :  { %v1033_v59 = vpop.permute.xlu1 %62  ;;  %803 = vtanh.f32 %v293_v54  ;;  %v384_v0 = vmul.f32 %v1082_v48, %v987_v32  ;;  %v385_v4 = vmul.f32 %v1082_v48, %v1003_v38  ;;  %v501_v32 = vmul.f32 %v1085_v49, %v1003_v38 }
  0x99   :  { %805 = vtanh.f32 %v168_v57  ;;  %v83_v23 = vmul.f32 %v992_v34, %v1033_v59  ;;  %v272_v24 = vmul.f32 %v995_v35, %v1033_v59 }
  0x9a   :  { %807 = vtanh.f32 %v294_v58  ;;  %v1048_v3 = vpop.permute.xlu0 %149  ;;  %v402_v15 = vadd.f32 %v395_v29, %v384_v0 }
  0x9b   :  { %v170_v12 = vadd.f32 %v1048_v3, %v128_v7  ;;  %v296_v18 = vadd.f32 %v289_v10, %v1048_v3  ;;  %v129_v53 = vadd.f32 %v122_v39, %v83_v23  ;;  %v290_v54 = vadd.f32 %v283_v47, %v272_v24 }
  0x9c   :  { %v1035_v60 = vpop.permute.xlu1 %67  ;;  %v513_v7 = vmul.f32 %v1069_v31, %v970_v21  ;;  %v1121_v10 = vmul.f32 %v1064_v22, %v979_v26  ;;  %v403_v23 = vadd.f32 %v396_v20, %v385_v4  ;;  %v502_v24 = vmul.f32 %v1085_v49, %v1019_v46 }
  0x9d   :  { %809 = vtanh.f32 %v170_v12  ;;  %v84_v57 = vmul.f32 %v992_v34, %v1035_v60  ;;  %v273_v58 = vmul.f32 %v995_v35, %v1035_v60 }
  0x9e   :  { %811 = vtanh.f32 %v296_v18  ;;  %v398_v18 = vmul.f32 %v1064_v22, %v1007_v40  ;;  %v1135_v38 = vpop.permute.xlu0 %72 }
  0xa1   :  { %v1056_v8 = vpop.permute.xlu1 %107  ;;  %v802_v11 = vpop.eup %801 }
  0xa2   :  { %v804_v13 = vpop.eup %803  ;;  %v123_v50 = vmul.f32 %v998_v36, %v1056_v8  ;;  %v284_v52 = vmul.f32 %v1001_v37, %v1056_v8 }
  0xa3   :  { %v806_v19 = vpop.eup %805 }
  0xa4   :  { %v808_v30 = vpop.eup %807  ;;  %v750_v41 = vpack.c.bf16 %v806_v19, %v802_v11  ;;  %v130_v5 = vadd.f32 %v123_v50, %v84_v57  ;;  %v291_v6 = vadd.f32 %v284_v52, %v273_v58  ;;  %v518_v19 = vadd.f32 %v511_v62, %v500_v2  ;;  %v1157_v62 = vpop.permute.xlu0 %164 }
  0xa5   :  { %v759_v43 = vpack.c.bf16 %v808_v30, %v804_v13  ;;  %v387_v13 = vmul.f32 %v1082_v48, %v989_v33  ;;  %v386_v30 = vmul.f32 %v1082_v48, %v1019_v46  ;;  %v409_v33 = vadd.f32 %v402_v15, %v1025_v51 }
  0xa6   :  { %v1075_v42 = vpop.permute.xlu1 %144  ;;  %751 = vmatpush3.bf16.msra.mxu0 %v750_v41  ;;  %v525_v41 = vadd.f32 %v518_v19, %v1025_v51  ;;  %v274_v50 = vmul.f32 %v995_v35, %v1135_v38  ;;  %v400_v35 = vmul.f32 %v1064_v22, %v1056_v8  ;;  %v389_v2 = vmul.f32 %v1082_v48, %v1035_v60 }
  0xa7   :  { %v169_v44 = vadd.f32 %v1075_v42, %v127_v27  ;;  %v295_v45 = vadd.f32 %v288_v28, %v1075_v42  ;;  %760 = vmatpush3.bf16.msra.mxu1 %v759_v43  ;;  %752 = vmatprep.subr.bf16.mxu0 %v883_v14  ;;  %v810_v16 = vpop.eup %809  ;;  %v514_v28 = vmul.f32 %v1069_v31, %v1007_v40 }
  0xa8   :  { %761 = vmatprep.subr.bf16.mxu1 %v883_v14  ;;  %v812_v27 = vpop.eup %811  ;;  %v410_v43 = vadd.f32 %v403_v23, %v1029_v55  ;;  %v85_v40 = vmul.f32 %v992_v34, %v1135_v38  ;;  %v405_v46 = vadd.f32 %v398_v18, %v387_v13  ;;  %v404_v57 = vadd.f32 %v397_v63, %v386_v30 }
  0xa9   :  { %813 = vtanh.f32 %v169_v44  ;;  %v519_v44 = vadd.f32 %v512_v9, %v501_v32  ;;  %v388_v34 = vmul.f32 %v1082_v48, %v1033_v59  ;;  %v515_v9 = vmul.f32 %v1069_v31, %v979_v26 }
  0xaa   :  { %815 = vtanh.f32 %v295_v45  ;;  %v1092_v56 = vpop.permute.xlu1 %154  ;;  %v411_v4 = vadd.f32 %v404_v57, %v1075_v42  ;;  %v412_v32 = vadd.f32 %v405_v46, %v1048_v3 }
  0xab   :  { %v171_v61 = vadd.f32 %v1092_v56, %v129_v53  ;;  %v297_v1 = vadd.f32 %v290_v54, %v1092_v56  ;;  %v526_v54 = vadd.f32 %v519_v44, %v1029_v55 }
  0xad   :  { %817 = vtanh.f32 %v171_v61 }
  0xae   :  { %v1123_v11 = vpop.permute.xlu1 %159  ;;  %819 = vtanh.f32 %v297_v1  ;;  %v521_v1 = vadd.f32 %v514_v28, %v503_v25  ;;  %v406_v25 = vadd.f32 %v1121_v10, %v388_v34 }
  0xaf   :  { %v172_v12 = vadd.f32 %v1123_v11, %v130_v5  ;;  %v298_v21 = vadd.f32 %v291_v6, %v1123_v11  ;;  %v505_v6 = vmul.f32 %v1085_v49, %v1035_v60 }
  0xb0   :  { %v528_v13 = vadd.f32 %v521_v1, %v1048_v3  ;;  %v390_v3 = vmul.f32 %v1082_v48, %v1135_v38  ;;  %v413_v10 = vadd.f32 %v406_v25, %v1092_v56 }
  0xb1   :  { %821 = vtanh.f32 %v172_v12  ;;  %v407_v12 = vadd.f32 %v400_v35, %v389_v2 }
  0xb2   :  { %823 = vtanh.f32 %v298_v21 }
  0xb3   :  { %v814_v39 = vpop.eup %813  ;;  %v112_v45 = vpop.permute.xlu1 %111  ;;  %825 = vtanh.f32 %v409_v33  ;;  %v414_v60 = vadd.f32 %v407_v12, %v1123_v11  ;;  %v35_v33 = vld [vmem:[%s1231_s3] sm:$0x3]  ;;  %s886_s3 = smov [#allocation2]  }
  0xb4   :  { %v816_v47 = vpop.eup %815  ;;  %v124_v52 = vmul.f32 %v998_v36, %v112_v45  ;;  %v285_v53 = vmul.f32 %v1001_v37, %v112_v45  ;;  %v753_v29 = vpack.c.bf16 %v810_v16, %v814_v39  ;;  %827 = vtanh.f32 %v525_v41  ;;  %s633_s23 = sshll.u32 %s886_s3, 4  ;;  %s634_s23 = int_to_ptr.vmem [resolvable:$true] %s633_s23 }
  0xb5   :  { %v762_v51 = vpack.c.bf16 %v812_v27, %v816_v47  ;;  %v520_v36 = vadd.f32 %v513_v7, %v502_v24  ;;  %829 = vtanh.f32 %v410_v43  ;;  %v516_v37 = vmul.f32 %v1069_v31, %v1056_v8  ;;  %s857_s24 = scalar_lea.vmem %s634_s23, 128  ;;  %p862_p1 = scmp.lt.s32.totalorder %s634_s23, %s634_s23 }
  0xb6   :  { %v131_v58 = vadd.f32 %v124_v52, %v85_v40  ;;  %v292_v61 = vadd.f32 %v285_v53, %v274_v50  ;;  %754 = vmatpush3.bf16.msra.mxu0 %v753_v29  ;;  %831 = vtanh.f32 %v526_v54  ;;  %v504_v8 = vmul.f32 %v1085_v49, %v1033_v59  ;;  %p858_p0 = scmp.ne.s32.totalorder %s634_s23, %s857_s24  ;;  %p863_p2 = scmp.lt.s32.totalorder %s857_s24, %s857_s24 }
  0xb7   :  { %763 = vmatpush3.bf16.msra.mxu1 %v762_v51  ;;  %755 = vmatprep.subr.bf16.mxu0 %v883_v14  ;;  %v818_v0 = vpop.eup %817  ;;  %v527_v7 = vadd.f32 %v520_v36, %v1075_v42  ;;  %v523_v59 = vadd.f32 %v516_v37, %v505_v6  ;;  %v401_v42 = vmul.f32 %v1064_v22, %v112_v45 }
  0xb8   :  { %v173_v55 = vadd.f32 %v1157_v62, %v131_v58  ;;  %v299_v63 = vadd.f32 %v292_v61, %v1157_v62  ;;  %764 = vmatprep.subr.bf16.mxu1 %v883_v14  ;;  %v820_v5 = vpop.eup %819  ;;  %v522_v18 = vadd.f32 %v515_v9, %v504_v8  ;;  %v517_v19 = vmul.f32 %v1069_v31, %v112_v45  ;;  %v184_v61 = vpop.permute.xlu1 %183  ;;  %p864_p3 = por %p863_p2, %p862_p1 }
  0xb9   :  { %v530_v26 = vadd.f32 %v523_v59, %v1123_v11  ;;  %v506_v22 = vmul.f32 %v1085_v49, %v1135_v38  ;;  %v408_v11 = vadd.f32 %v401_v42, %v390_v3 }
  0xba   :  { %833 = vtanh.f32 %v173_v55  ;;  %v529_v27 = vadd.f32 %v522_v18, %v1092_v56  ;;  %p865_p4 = pnand %p864_p3, %p858_p0 }
  0xbb   :  { %v822_v20 = vpop.eup %821  ;;  %835 = vtanh.f32 %v299_v63  ;;  %v524_v48 = vadd.f32 %v517_v19, %v506_v22  ;;  %v415_v56 = vadd.f32 %v408_v11, %v1157_v62 }
  0xbc   :  { %v824_v21 = vpop.eup %823  ;;  %v756_v15 = vpack.c.bf16 %v822_v20, %v818_v0  ;;  %837 = vtanh.f32 %v411_v4 }
  0xbd   :  { %v765_v16 = vpack.c.bf16 %v824_v21, %v820_v5  ;;  %839 = vtanh.f32 %v527_v7  ;;  %v826_v23 = vpop.eup %825  ;;  %v531_v38 = vadd.f32 %v524_v48, %v1157_v62 }
  0xbe   :  { %757 = vmatpush3.bf16.msra.mxu0 %v756_v15  ;;  %841 = vtanh.f32 %v412_v32  ;;  %v828_v31 = vpop.eup %827 }
  0xbf   :  { %766 = vmatpush3.bf16.msra.mxu1 %v765_v16  ;;  %693 = vmatprep.subr.mxu0 %v885_v17  ;;  %843 = vtanh.f32 %v528_v13  ;;  %v830_v28 = vpop.eup %829 }
  0xc0   :  { %710 = vmatprep.subr.mxu1 %v885_v17  ;;  %845 = vtanh.f32 %v414_v60  ;;  %v832_v30 = vpop.eup %831  ;;  %v768_v24 = vpack.c.bf16 %v830_v28, %v826_v23 }
  0xc1   :  { %847 = vtanh.f32 %v530_v26  ;;  %v777_v43 = vpack.c.bf16 %v832_v30, %v828_v31 }
  0xc2   :  { %849 = vtanh.f32 %v413_v10 }
  0xc3   :  { %851 = vtanh.f32 %v529_v27 }
  0xc4   :  { %v834_v39 = vpop.eup %833  ;;  %853 = vtanh.f32 %v415_v56 }
  0xc5   :  { %v836_v49 = vpop.eup %835  ;;  %694 = vmatpush3.msk.msra.mxu0 %vm190_vm1, %v834_v39  ;;  %855 = vtanh.f32 %v531_v38 }
  0xc6   :  { %711 = vmatpush3.msk.msra.mxu1 %vm190_vm1, %v836_v49  ;;  %696 = vmatmul.mubr.msk.f32.vlgmr.msra.gmra.mrb[0].mxu0 %vm186_vm2, %v35_v33  ;;  %v838_v41 = vpop.eup %837 }
  0xc7   :  { %713 = vmatmul.mubr.msk.f32.vlgmr.msra.gmra.mrb[0].mxu1 %vm186_vm2, %v35_v33  ;;  %767 = vmatprep.subr.bf16.mxu0 %v883_v14  ;;  %v840_v44 = vpop.eup %839 }
  0xc8   :  { %776 = vmatprep.subr.bf16.mxu1 %v883_v14  ;;  %769 = vmatpush3.bf16.msra.mxu0 %v768_v24  ;;  %v842_v45 = vpop.eup %841 }
  0xc9   :  { %778 = vmatpush3.bf16.msra.mxu1 %v777_v43  ;;  %770 = vmatprep.subr.bf16.mxu0 %v883_v14  ;;  %v844_v47 = vpop.eup %843  ;;  %v771_v40 = vpack.c.bf16 %v842_v45, %v838_v41 }
  0xca   :  { %779 = vmatprep.subr.bf16.mxu1 %v883_v14  ;;  %729 = vmatprep.mubr.msk.f32.mxu0 %vm884_vm0, %v885_v17  ;;  %v846_v50 = vpop.eup %845  ;;  %v780_v52 = vpack.c.bf16 %v844_v47, %v840_v44 }
  0xcb   :  { %746 = vmatprep.mubr.msk.f32.mxu1 %vm884_vm0, %v885_v17  ;;  %v848_v53 = vpop.eup %847 }
  0xcc   :  { %772 = vmatpush3.bf16.msra.mxu0 %v771_v40  ;;  %v850_v54 = vpop.eup %849 }
  0xcd   :  { %781 = vmatpush3.bf16.msra.mxu1 %v780_v52  ;;  %773 = vmatprep.subr.bf16.mxu0 %v883_v14  ;;  %v852_v46 = vpop.eup %851  ;;  %v774_v29 = vpack.c.bf16 %v846_v50, %v850_v54 }
  0xce   :  { %782 = vmatprep.subr.bf16.mxu1 %v883_v14  ;;  %v783_v51 = vpack.c.bf16 %v848_v53, %v852_v46  ;;  %v854_v57 = vpop.eup %853 }
  0xcf   :  { %v856_v58 = vpop.eup %855 }
  0xd0   :  { %775 = vmatpush3.bf16.msra.mxu0 %v774_v29 }
  0xd1   :  { %784 = vmatpush3.bf16.msra.mxu1 %v783_v51  ;;  %727 = vmatprep.subr.mxu0 %v885_v17 }
  0xd2   :  { %744 = vmatprep.subr.mxu1 %v885_v17 }
  0xd4   :  { %728 = vmatpush3.msk.msra.mxu0 %vm190_vm1, %v854_v57 }
  0xd5   :  { %745 = vmatpush3.msk.msra.mxu1 %vm190_vm1, %v856_v58  ;;  %730 = vmatmul.mubr.msk.f32.vlgmr.msra.gmra.mrb[2].mxu0 %vm186_vm2, %v35_v33 }
  0xd6   :  { %747 = vmatmul.mubr.msk.f32.vlgmr.msra.gmra.mrb[2].mxu1 %vm186_vm2, %v35_v33 }
 0x199   :  { %v260_v14 = vpop.f32.mrb[0].mxu0 }
 0x19a   :  { %v376_v34 = vpop.f32.mrb[0].mxu1  ;;  %v697_v35 = vpop.f32.mrb[1].mxu0  ;;  %v261_v62 = vadd.f32 %v260_v14, %v184_v61 }
 0x19b   :  { %v377_v36 = vadd.f32 %v376_v34, %v184_v61  ;;  %v714_v37 = vpop.f32.mrb[1].mxu1 }
 0x19d   :  { %v613_v55 = vrot.slane %v377_v36, 6 }
 0x19f   :  { %v621_v17 = vsel %vm190_vm1, %v261_v62, %v613_v55 }
 0x1a8   :  { %v492_v63 = vpop.f32.mrb[2].mxu0 }
 0x1a9   :  { %v493_v0 = vadd.f32 %v492_v63, %v184_v61  ;;  %v608_v1 = vpop.f32.mrb[2].mxu1  ;;  %v731_v2 = vpop.f32.mrb[3].mxu0 }
 0x1aa   :  { %v609_v4 = vadd.f32 %v608_v1, %v184_v61  ;;  %v748_v5 = vpop.f32.mrb[3].mxu1 }
 0x1ab   :  { %v616_v8 = vrot.slane %v493_v0, 4 }
 0x1ac   :  { %v619_v6 = vrot.slane %v609_v4, 2 }
 0x1ad   :  { %v623_v7 = vsel %vm622_vm3, %v621_v17, %v616_v8 }
 0x1ae   :  { %v625_v20 = vsel %vm624_vm4, %v623_v7, %v619_v6 }
 0x1af   :  { %626 = vst [vmem:[#allocation2] sm:$0xff] %v625_v20 }
 0x1b0   :  { %868 = shalt.err (!%p865_p4)
}
 0x1b1   :  { %s869_s27 = scalar_lea.hbm %s1233_s5, 128 }
 0x1b2   :  { %p870_p5 = scmp.ne.s32.totalorder %s1233_s5, %s869_s27  ;;  %p873_p6 = scmp.lt.u32.totalorder %s869_s27, %s1233_s5 }
 0x1b4   :  { %p875_p7 = pnand %p873_p6, %p870_p5 }
 0x1b6   :  { %878 = shalt.err (!%p875_p7)
}
 0x1b7   :  { %636 = dma.vmem_to_hbm [thread:$0]  %s634_s23, 128, %s1233_s5, [#allocation3]  }
 0x1b8   :  { %879 = dma.done.wait [#allocation3], 128  }
 0x1b9   :  { %880 = vsyncadd [#allocation3], 4294967168 }
 0x1ba   :  { %640 = vsyncpa [#allocation3], 1 }

</bundles_post_ra>
